<compile_context>
chip_gen: v7x
topology: tpu7x:2x2x1
jax: 0.10.0
libtpu: 0.0.40
codegen_flags: <defaults>
</compile_context>

<pallas_src>
import jax
import jax.numpy as jnp
from jax.experimental import pallas as pl
from jax.experimental.pallas import tpu as pltpu


def _round_up(x, m):
    return ((x + m - 1) // m) * m


def _adversary_kernel(z_ref, w1_ref, b1_ref, w2_ref, b2_ref, o_ref):
    # z_ref : (tb8, 128)  -- 8 samples per row, 16 features each (natural layout)
    # w1_ref: (128, 64)   -- block-diagonal w1^T (8 copies on the diagonal)
    # b1_ref: (1, 64)     -- b1 tiled 8x
    # w2_ref: (64, 8)     -- block-diagonal w2^T
    # b2_ref: (1, 8)      -- b2 tiled 8x
    # o_ref : (tb8, 8)    -- out[8g + s] lives at (g, s): natural row-major layout
    z = z_ref[...]

    # Linear(16, 8) + ReLU for 8 samples at once via the block-diagonal weight.
    h = jnp.dot(z, w1_ref[...], preferred_element_type=jnp.float32) + b1_ref[...]
    h = jnp.maximum(h, 0.0)                                          # (tb8, 64)

    # Linear(8, 1) via the (64, 8) block-diagonal weight.
    y = jnp.dot(h, w2_ref[...], preferred_element_type=jnp.float32) + b2_ref[...]  # (tb8, 8)

    # Sigmoid via the tanh identity: one EUP op, no divide, no inf intermediates.
    o_ref[...] = 0.5 * (1.0 + jnp.tanh(0.5 * y))


def adversary_forward(z, w1, b1, w2, b2, *, tile_b=32768):
    """Forward pass of Adversary.

    z : (B, 16) f32
    w1: (8, 16) f32  (torch Linear layout: out x in)
    b1: (8,)    f32
    w2: (1, 8)  f32
    b2: (1,)    f32
    Returns (B, 1) f32.  GradientReversal is identity in forward.
    """
    B = z.shape[0]
    z = z.astype(jnp.float32)

    # Pad the sample count to a multiple of 8 only when needed; otherwise the
    # (B, 16) -> (B/8, 128) reshape below is a free row-major reinterpretation.
    Bp = _round_up(B, 8)
    if Bp != B:
        z = jnp.pad(z, ((0, Bp - B), (0, 0)))
    rows = Bp // 8
    z_blk = z.reshape(rows, 128)

    # Row-tile sizing:
    #  - big tiles to amortize the ~0.35us per-grid-step overhead,
    #  - >= 2 grid steps when there is enough work (v7x megacore sharding),
    #  - partial last block via pl.cdiv (no full-tile batch padding).
    tb8_max = max(8, (int(tile_b) // 64) * 8)          # rows per tile, multiple of 8
    if rows < 8:
        tb8 = rows                                     # single tiny block == full extent
    else:
        target = _round_up(pl.cdiv(rows, 2), 8)        # aim for >= 2 steps
        tb8 = max(8, min(tb8_max, target))
    grid = (pl.cdiv(rows, tb8),)

    # Block-diagonal weight packing (tiny: 128x64 and 64x8 f32).
    eye8 = jnp.eye(8, dtype=jnp.float32)
    w1bd = jnp.kron(eye8, w1.astype(jnp.float32).T)     # (128, 64)
    w2bd = jnp.kron(eye8, w2.astype(jnp.float32).T)     # (64, 8)
    b1t = jnp.tile(b1.astype(jnp.float32), 8).reshape(1, 64)
    b2t = jnp.tile(b2.astype(jnp.float32), 8).reshape(1, 8)

    out = pl.pallas_call(
        _adversary_kernel,
        out_shape=jax.ShapeDtypeStruct((rows, 8), jnp.float32),
        grid=grid,
        in_specs=[
            pl.BlockSpec((tb8, 128), lambda i: (i, 0)),   # z     : tiled over batch rows
            pl.BlockSpec((128, 64), lambda i: (0, 0)),    # w1bd  : resident
            pl.BlockSpec((1, 64), lambda i: (0, 0)),      # b1    : resident
            pl.BlockSpec((64, 8), lambda i: (0, 0)),      # w2bd  : resident
            pl.BlockSpec((1, 8), lambda i: (0, 0)),       # b2    : resident
        ],
        out_specs=pl.BlockSpec((tb8, 8), lambda i: (i, 0)),
        compiler_params=pltpu.CompilerParams(
            dimension_semantics=("parallel",),
        ),
    )(z_blk, w1bd, b1t, w2bd, b2t)

    # (rows, 8) row-major is exactly the flat (Bp,) output; both ops are cheap.
    return out.reshape(Bp, 1)[:B]


def init_params(key):
    """Deterministic init mirroring nn.Linear shapes: W1 (8,16), b1 (8,), W2 (1,8), b2 (1,)."""
    k1, k2, k3, k4 = jax.random.split(key, 4)
    lim1 = 1.0 / jnp.sqrt(16.0)
    lim2 = 1.0 / jnp.sqrt(8.0)
    w1 = jax.random.uniform(k1, (8, 16), jnp.float32, -lim1, lim1)
    b1 = jax.random.uniform(k2, (8,), jnp.float32, -lim1, lim1)
    w2 = jax.random.uniform(k3, (1, 8), jnp.float32, -lim2, lim2)
    b2 = jax.random.uniform(k4, (1,), jnp.float32, -lim2, lim2)
    return w1, b1, w2, b2


if __name__ == "__main__":
    key = jax.random.PRNGKey(0)
    k_z, k_p = jax.random.split(key)

    B = 8   # tiny demo batch; the kernel tiles the batch internally
    z = jax.random.normal(k_z, (B, 16), jnp.float32)
    w1, b1, w2, b2 = init_params(k_p)

    out = adversary_forward(z, w1, b1, w2, b2)
    out = jax.block_until_ready(out)

    # Reference in plain JAX (same math as the PyTorch module forward).
    h_ref = jnp.maximum(z @ w1.T + b1, 0.0)
    y_ref = jax.nn.sigmoid(h_ref @ w2.T + b2)          # (B, 1)
    assert out.shape == (B, 1)
    assert jnp.allclose(out, y_ref, atol=1e-5, rtol=1e-5)

    print("KERNEL_OK")
</pallas_src>

<mosaic_0001>
module attributes {stable_mosaic.version = 11 : i64} {
  func.func @_adversary_kernel(%arg0: i32, %arg1: memref<1x128xf32, #tpu.memory_space<vmem>>, %arg2: memref<128x64xf32, #tpu.memory_space<vmem>>, %arg3: memref<1x64xf32, #tpu.memory_space<vmem>>, %arg4: memref<64x8xf32, #tpu.memory_space<vmem>>, %arg5: memref<1x8xf32, #tpu.memory_space<vmem>>, %arg6: memref<1x8xf32, #tpu.memory_space<vmem>>) attributes {dimension_semantics = [#tpu.dimension_semantics<parallel>], iteration_bounds = array<i64: 1>, scalar_prefetch = 0 : i64, scratch_operands = 0 : i64, tpu.core_type = #tpu.core_type<tc>, window_params = [{transform_indices = @transform_0, window_bounds = array<i64: 1, 128>}, {pipeline_mode = #tpu.pipeline_mode<synchronous>, transform_indices = @transform_1, window_bounds = array<i64: 128, 64>}, {pipeline_mode = #tpu.pipeline_mode<synchronous>, transform_indices = @transform_2, window_bounds = array<i64: 1, 64>}, {pipeline_mode = #tpu.pipeline_mode<synchronous>, transform_indices = @transform_3, window_bounds = array<i64: 64, 8>}, {pipeline_mode = #tpu.pipeline_mode<synchronous>, transform_indices = @transform_4, window_bounds = array<i64: 1, 8>}, {transform_indices = @transform_5, window_bounds = array<i64: 1, 8>}]} {
    %c0 = arith.constant 0 : index
    %c0_0 = arith.constant 0 : index
    %0 = vector.load %arg1[%c0, %c0_0] : memref<1x128xf32, #tpu.memory_space<vmem>>, vector<1x128xf32>
    %c0_1 = arith.constant 0 : index
    %c0_2 = arith.constant 0 : index
    %1 = vector.load %arg2[%c0_1, %c0_2] : memref<128x64xf32, #tpu.memory_space<vmem>>, vector<128x64xf32>
    %cst = arith.constant dense<0.000000e+00> : vector<1x64xf32>
    %2 = tpu.matmul %0, %1, %cst {dimension_numbers = #tpu.dot_dimension_numbers<[1], [0], [0], [1], [0, 0, 1, 1], [], []>} : vector<1x128xf32>, vector<128x64xf32>, vector<1x64xf32> -> vector<1x64xf32>
    %c0_3 = arith.constant 0 : index
    %c0_4 = arith.constant 0 : index
    %3 = vector.load %arg3[%c0_3, %c0_4] : memref<1x64xf32, #tpu.memory_space<vmem>>, vector<1x64xf32>
    %4 = arith.addf %2, %3 : vector<1x64xf32>
    %cst_5 = arith.constant 0.000000e+00 : f32
    %5 = vector.broadcast %cst_5 : f32 to vector<1x64xf32>
    %6 = arith.maximumf %4, %5 : vector<1x64xf32>
    %c0_6 = arith.constant 0 : index
    %c0_7 = arith.constant 0 : index
    %7 = vector.load %arg4[%c0_6, %c0_7] : memref<64x8xf32, #tpu.memory_space<vmem>>, vector<64x8xf32>
    %cst_8 = arith.constant dense<0.000000e+00> : vector<1x8xf32>
    %8 = tpu.matmul %6, %7, %cst_8 {dimension_numbers = #tpu.dot_dimension_numbers<[1], [0], [0], [1], [0, 0, 1, 1], [], []>} : vector<1x64xf32>, vector<64x8xf32>, vector<1x8xf32> -> vector<1x8xf32>
    %c0_9 = arith.constant 0 : index
    %c0_10 = arith.constant 0 : index
    %9 = vector.load %arg5[%c0_9, %c0_10] : memref<1x8xf32, #tpu.memory_space<vmem>>, vector<1x8xf32>
    %10 = arith.addf %8, %9 : vector<1x8xf32>
    %cst_11 = arith.constant 5.000000e-01 : f32
    %11 = vector.broadcast %cst_11 : f32 to vector<1x8xf32>
    %12 = arith.mulf %11, %10 : vector<1x8xf32>
    %13 = math.tanh %12 : vector<1x8xf32>
    %cst_12 = arith.constant 1.000000e+00 : f32
    %14 = vector.broadcast %cst_12 : f32 to vector<1x8xf32>
    %15 = arith.addf %14, %13 : vector<1x8xf32>
    %cst_13 = arith.constant 5.000000e-01 : f32
    %16 = vector.broadcast %cst_13 : f32 to vector<1x8xf32>
    %17 = arith.mulf %16, %15 : vector<1x8xf32>
    %c0_14 = arith.constant 0 : index
    %c0_15 = arith.constant 0 : index
    %18 = vector.load %arg6[%c0_14, %c0_15] : memref<1x8xf32, #tpu.memory_space<vmem>>, vector<1x8xf32>
    tpu.vector_store %arg6[%c0_14, %c0_15], %17 {strides = array<i32>} : memref<1x8xf32, #tpu.memory_space<vmem>>, vector<1x8xf32>,
    return
  }
  func.func @transform_0(%arg0: i32) -> (i32, i32) {
    %c0_i32 = arith.constant 0 : i32
    %c0_i32_0 = arith.constant 0 : i32
    return %arg0, %c0_i32 : i32, i32
  }
  func.func @transform_1(%arg0: i32) -> (i32, i32) {
    %c0_i32 = arith.constant 0 : i32
    %c0_i32_0 = arith.constant 0 : i32
    %c0_i32_1 = arith.constant 0 : i32
    return %c0_i32, %c0_i32_0 : i32, i32
  }
  func.func @transform_2(%arg0: i32) -> (i32, i32) {
    %c0_i32 = arith.constant 0 : i32
    %c0_i32_0 = arith.constant 0 : i32
    %c0_i32_1 = arith.constant 0 : i32
    return %c0_i32, %c0_i32_0 : i32, i32
  }
  func.func @transform_3(%arg0: i32) -> (i32, i32) {
    %c0_i32 = arith.constant 0 : i32
    %c0_i32_0 = arith.constant 0 : i32
    %c0_i32_1 = arith.constant 0 : i32
    return %c0_i32, %c0_i32_0 : i32, i32
  }
  func.func @transform_4(%arg0: i32) -> (i32, i32) {
    %c0_i32 = arith.constant 0 : i32
    %c0_i32_0 = arith.constant 0 : i32
    %c0_i32_1 = arith.constant 0 : i32
    return %c0_i32, %c0_i32_0 : i32, i32
  }
  func.func @transform_5(%arg0: i32) -> (i32, i32) {
    %c0_i32 = arith.constant 0 : i32
    %c0_i32_0 = arith.constant 0 : i32
    return %arg0, %c0_i32 : i32, i32
  }
}

</mosaic_0001>

<bundles_post_ra>
// kernel: tpu_custom_call.1
= control target key start
LH: loop header
LB: loop body
LE: loop exit
PB: predicated region body
PF: predicated region fallthrough
CT: control target
= control target key end

     0   :  { %v360_v3 = vmov 0.0|0.0   ;;  %vm361_vm0 = vmmov 0   ;;  %v362_v6 = vmov 0.0   ;;  %s487_s0 = inlined_call_operand.vmem [shape: f32[1,128], index: 0, kind: input, shape index: {}]   ;;  %s488_s1 = inlined_call_operand.vmem [shape: f32[128,64], index: 1, kind: input, shape index: {}]   ;;  %s489_s2 = inlined_call_operand.vmem [shape: f32[1,64], index: 2, kind: input, shape index: {}]   ;;  %s490_s3 = inlined_call_operand.vmem [shape: f32[64,8], index: 3, kind: input, shape index: {}]   ;;  %s491_s4 = inlined_call_operand.vmem [shape: f32[1,8], index: 4, kind: input, shape index: {}]   ;;  %s492_s5 = inlined_call_operand.hbm [shape: f32[1,8], index: 5, kind: output, shape index: {}]  }
   0x1   :  { %v22_v0 = vld [vmem:[%s488_s1] sm:$0xff]  ;;  %v23_v1 = vld [vmem:[%s488_s1 + $0x8] sm:$0xff]  ;;  %v24_v2 = vld [vmem:[%s488_s1 + $0x10] sm:$0xff]  ;;  %294 = vmatprep.subr.bf16.mxu0 %v360_v3  ;;  %272 = vmatprep.mubr.msk.f32.mxu0 %vm361_vm0, %v362_v6 }
   0x2   :  { %v295_v4 = vpack.c.bf16 %v23_v1, %v22_v0  ;;  %v25_v5 = vld [vmem:[%s488_s1 + $0x18] sm:$0xff]  ;;  %318 = vmatprep.subr.bf16.mxu1 %v360_v3  ;;  %291 = vmatprep.mubr.msk.f32.mxu1 %vm361_vm0, %v362_v6  ;;  %v26_v8 = vld [vmem:[%s488_s1 + $0x20] sm:$0xff]  ;;  %v27_v9 = vld [vmem:[%s488_s1 + $0x28] sm:$0xff] }
   0x3   :  { %v298_v7 = vpack.c.bf16 %v25_v5, %v24_v2  ;;  %v110_v10 = vld [vmem:[%s490_s3] sm:$0xff]  ;;  %v111_v11 = vld [vmem:[%s490_s3 + $0x8] sm:$0xff]  ;;  %v112_v12 = vld [vmem:[%s490_s3 + $0x10] sm:$0xff]  ;;  %v301_v14 = vpack.c.bf16 %v27_v9, %v26_v8 }
   0x4   :  { %296 = vmatpush3.bf16.msra.mxu0 %v295_v4  ;;  %v113_v13 = vld [vmem:[%s490_s3 + $0x18] sm:$0xff]  ;;  %v319_v15 = vpack.c.bf16 %v111_v11, %v110_v10  ;;  %v28_v16 = vld [vmem:[%s488_s1 + $0x30] sm:$0xff] }
   0x5   :  { %297 = vmatprep.subr.bf16.mxu0 %v360_v3  ;;  %v29_v17 = vld [vmem:[%s488_s1 + $0x38] sm:$0xff] }
   0x8   :  { %299 = vmatpush3.bf16.msra.mxu0 %v298_v7 }
   0x9   :  { %300 = vmatprep.subr.bf16.mxu0 %v360_v3 }
   0xa   :  { %10 = vsyncpa [#allocation3], 0  ;;  %320 = vmatpush3.bf16.msra.mxu1 %v319_v15  ;;  %v322_v18 = vpack.c.bf16 %v113_v13, %v112_v12  ;;  %v114_v19 = vld [vmem:[%s490_s3 + $0x20] sm:$0xff]  ;;  %v115_v20 = vld [vmem:[%s490_s3 + $0x28] sm:$0xff]  ;;  %v304_v21 = vpack.c.bf16 %v29_v17, %v28_v16  ;;  %vm119_vm1 = vcmask 523264   ;;  %vm197_vm2 = vcmask 57344  }
   0xb   :  { %321 = vmatprep.subr.bf16.mxu1 %v360_v3  ;;  %v30_v22 = vld [vmem:[%s488_s1 + $0x40] sm:$0xff]  ;;  %v31_v23 = vld [vmem:[%s488_s1 + $0x48] sm:$0xff]  ;;  %v325_v24 = vpack.c.bf16 %v115_v20, %v114_v19  ;;  %v32_v26 = vld [vmem:[%s488_s1 + $0x50] sm:$0xff] }
   0xc   :  { %302 = vmatpush3.bf16.msra.mxu0 %v301_v14  ;;  %v307_v25 = vpack.c.bf16 %v31_v23, %v30_v22  ;;  %v33_v27 = vld [vmem:[%s488_s1 + $0x58] sm:$0xff]  ;;  %v34_v29 = vld [vmem:[%s488_s1 + $0x60] sm:$0xff]  ;;  %v35_v30 = vld [vmem:[%s488_s1 + $0x68] sm:$0xff] }
   0xd   :  { %303 = vmatprep.subr.bf16.mxu0 %v360_v3  ;;  %v310_v28 = vpack.c.bf16 %v33_v27, %v32_v26  ;;  %v313_v31 = vpack.c.bf16 %v35_v30, %v34_v29  ;;  %v36_v32 = vld [vmem:[%s488_s1 + $0x70] sm:$0xff]  ;;  %v37_v33 = vld [vmem:[%s488_s1 + $0x78] sm:$0xff]  ;;  %v21_v35 = vld [vmem:[%s487_s0] sm:$0x1] }
   0xe   :  { %323 = vmatpush3.bf16.msra.mxu1 %v322_v18  ;;  %v316_v34 = vpack.c.bf16 %v37_v33, %v36_v32  ;;  %v116_v36 = vld [vmem:[%s490_s3 + $0x30] sm:$0xff]  ;;  %v117_v37 = vld [vmem:[%s490_s3 + $0x38] sm:$0xff]  ;;  %v38_v39 = vld [vmem:[%s489_s2] sm:$0x1]  ;;  %s363_s3 = smov [#allocation2]  }
   0xf   :  { %324 = vmatprep.subr.bf16.mxu1 %v360_v3  ;;  %v328_v38 = vpack.c.bf16 %v117_v37, %v116_v36  ;;  %v118_v44 = vld [vmem:[%s491_s4] sm:$0x1]  ;;  %s205_s20 = sshll.u32 %s363_s3, 4  ;;  %s206_s20 = int_to_ptr.vmem [resolvable:$true] %s205_s20 }
  0x10   :  { %305 = vmatpush3.bf16.msra.mxu0 %v304_v21  ;;  %s336_s2 = scalar_lea.vmem %s206_s20, 16  ;;  %s340_s21 = scalar_lea.vmem %s206_s20, 32 }
  0x11   :  { %306 = vmatprep.subr.bf16.mxu0 %v360_v3  ;;  %p337_p0 = scmp.ne.s32.totalorder %s206_s20, %s336_s2  ;;  %p341_p1 = scmp.lt.s32.totalorder %s206_s20, %s206_s20 }
  0x12   :  { %326 = vmatpush3.bf16.msra.mxu1 %v325_v24  ;;  %p342_p2 = scmp.lt.s32.totalorder %s340_s21, %s336_s2 }
  0x13   :  { %327 = vmatprep.subr.bf16.mxu1 %v360_v3 }
  0x14   :  { %308 = vmatpush3.bf16.msra.mxu0 %v307_v25  ;;  %p343_p3 = por %p342_p2, %p341_p1 }
  0x15   :  { %309 = vmatprep.subr.bf16.mxu0 %v360_v3 }
  0x16   :  { %329 = vmatpush3.bf16.msra.mxu1 %v328_v38  ;;  %p344_p4 = pnand %p343_p3, %p337_p0 }
  0x18   :  { %311 = vmatpush3.bf16.msra.mxu0 %v310_v28 }
  0x19   :  { %312 = vmatprep.subr.bf16.mxu0 %v360_v3 }
  0x1c   :  { %314 = vmatpush3.bf16.msra.mxu0 %v313_v31 }
  0x1d   :  { %315 = vmatprep.subr.bf16.mxu0 %v360_v3 }
  0x20   :  { %317 = vmatpush3.bf16.msra.mxu0 %v316_v34 }
  0x23   :  { %273 = vmatmul.mubr.f32.vlgmr.msra.gmra.mrb[0].mxu0 %v21_v35 }
  0xf6   :  { %v105_v40 = vpop.f32.mrb[0].mxu0 }
  0xf7   :  { %v106_v41 = vadd.f32 %v105_v40, %v38_v39  ;;  %v274_v42 = vpop.f32.mrb[1].mxu0 }
  0xf9   :  { %v109_v43 = vmax.f32 %v106_v41, 0.0 }
  0xfb   :  { %292 = vmatmul.mubr.msk.f32.vlgmr.msra.gmra.mrb[0].mxu1 %vm119_vm1, %v109_v43 }
 0x1ce   :  { %v189_v45 = vpop.f32.mrb[0].mxu1 }
 0x1cf   :  { %v190_v46 = vadd.f32 %v189_v45, %v118_v44  ;;  %v293_v47 = vpop.f32.mrb[1].mxu1 }
 0x1d1   :  { %v193_v48 = vmul.f32 0.5, %v190_v46 }
 0x1d3   :  { %334 = vtanh.f32 %v193_v48 }
 0x1dd   :  { %v335_v49 = vpop.eup %334 }
 0x1de   :  { %v195_v50 = vadd.f32 1.0, %v335_v49 }
 0x1e0   :  { %v196_v51 = vmul.f32 0.5, %v195_v50 }
 0x1e2   :  { %198 = vst.msk [vmem:[#allocation2] sm:$0x1] %vm197_vm2, %v196_v51 }
 0x1e3   :  { %347 = shalt.err (!%p344_p4)
}
 0x1e4   :  { %s348_s23 = scalar_lea.hbm %s492_s5, 16 }
 0x1e5   :  { %p349_p5 = scmp.ne.s32.totalorder %s492_s5, %s348_s23  ;;  %p352_p6 = scmp.lt.u32.totalorder %s348_s23, %s492_s5 }
 0x1e7   :  { %p354_p7 = pnand %p352_p6, %p349_p5 }
 0x1e9   :  { %357 = shalt.err (!%p354_p7)
}
 0x1ea   :  { %208 = dma.vmem_to_hbm [thread:$0]  %s206_s20, 16, %s492_s5, [#allocation3]  }
 0x1eb   :  { %358 = dma.done.wait [#allocation3], 16  }
 0x1ec   :  { %359 = vsyncadd [#allocation3], 4294967280 }
 0x1ed   :  { %212 = vsyncpa [#allocation3], 1 }

</bundles_post_ra>
